<compile_context>
chip_gen: v5e
topology: v5e:2x2
jax: 0.10.0
libtpu: 0.0.40
codegen_flags: <defaults>
</compile_context>

<pallas_src>
import math

import numpy as np
import jax
import jax.numpy as jnp
from jax.experimental import pallas as pl
from jax.experimental.pallas import tpu as pltpu


def _round_up(x: int, m: int) -> int:
    return ((x + m - 1) // m) * m


def _sincos_kernel(x_ref, w_ref, out_ref):
    """x_ref: (TM, K) f32; w_ref: (K, D) f32; out_ref: (TM, D) out_dtype.

    One MXU matmul (phase offsets folded in via the ones/bias column/row),
    one sine, one lane-dense store.
    """
    phase = jnp.dot(x_ref[...], w_ref[...], preferred_element_type=jnp.float32)
    # NOTE: jnp.sin is a VPU range-reduction + polynomial (not EUP); on v7x this
    # is the likely VALU bottleneck.
    # TODO(synk): if bundle dumps confirm VALU-bound, derive the cos half as
    # sign*sqrt(1 - s^2) (sqrt runs on the EUP, a free slot) to halve the
    # transcendental work — needs precision validation near cos ~ 0.
    out_ref[...] = jnp.sin(phase).astype(out_ref.dtype)


class ContinuousPosEmbedSincos:
    """JAX/Pallas port of kappamodules ContinuousPosEmbed with mode='sincos'."""
    # TODO(synk): mode='learnable' (parameter-table gather + linear interpolation)
    # has no clean single-kernel equivalent here and is not ported.

    def __init__(self, dim: int, ndim: int, max_wavelength: int = 10000,
                 dtype=jnp.float32):
        self.dim = dim
        self.ndim = ndim
        self.max_wavelength = max_wavelength

        ndim_padding = dim % ndim
        dim_per_ndim = (dim - ndim_padding) // ndim
        sincos_padding = dim_per_ndim % 2
        self.padding = ndim_padding + sincos_padding * ndim
        self.eff_dim_per_wave = (dim - self.padding) // ndim
        assert self.eff_dim_per_wave > 0
        half = self.eff_dim_per_wave // 2

        # omega computed in float32 (same formula as the PyTorch buffer), cast last.
        exps = np.arange(0, self.eff_dim_per_wave, 2, dtype=np.float32) \
            / np.float32(self.eff_dim_per_wave)
        omega_f32 = (1.0 / np.power(np.float32(max_wavelength), exps)).astype(np.float32)
        self._omega_f32 = jnp.asarray(omega_f32)
        self.omega = self._omega_f32.astype(dtype)

        # Augmented frequency matrix with the phase offset folded in as a bias row:
        #   phase = [coords | 1] @ W_aug
        # Per coordinate axis d the channel layout is [sin(half) | cos(half)]
        # (matching rearrange '... ndim dim -> ... (ndim dim)').  cos channels get
        # a pi/2 bias (cos(x) == sin(x + pi/2)); padding channels are all-zero
        # columns so sin(0) == 0 matches the zero pad exactly.
        k = ndim + 1
        w_aug = np.zeros((k, dim), np.float32)
        for d in range(ndim):
            s = d * self.eff_dim_per_wave
            w_aug[d, s:s + half] = omega_f32                               # sin
            w_aug[d, s + half:s + 2 * half] = omega_f32                    # cos
            w_aug[k - 1, s + half:s + 2 * half] = np.float32(np.pi / 2)    # cos bias
        self.w_aug = jnp.asarray(w_aug)                                    # (K, dim)

        # Lane-packing factor: smallest P with (P * dim) % 128 == 0.
        p = 128 // math.gcd(dim, 128)
        self.pack_factor = p if (1 < p <= 16) else 1
        if self.pack_factor > 1:
            p = self.pack_factor
            w_packed = np.zeros((p * k, p * dim), np.float32)
            for q in range(p):
                w_packed[q * k:(q + 1) * k, q * dim:(q + 1) * dim] = w_aug
            self.w_packed = jnp.asarray(w_packed)                          # (P*K, P*dim)
        else:
            self.w_packed = None

    def __call__(self, coords, tile_rows: int = 1024, out_buffers=None):
        assert coords.shape[-1] == self.ndim
        out_dtype = coords.dtype
        lead_shape = coords.shape[:-1]
        m = int(np.prod(lead_shape)) if lead_shape else 1
        k = self.ndim + 1

        coords2d = coords.reshape(m, self.ndim).astype(jnp.float32)
        # Ones column folds the pi/2 phase offset into the matmul (no extra operand).
        x = jnp.concatenate([coords2d, jnp.ones((m, 1), jnp.float32)], axis=-1)

        # Lane-dense row packing — only when it never forces a post-call output slice.
        p = self.pack_factor if (self.pack_factor > 1 and m % self.pack_factor == 0) else 1
        if p > 1:
            x = x.reshape(m // p, p * k)
            w = self.w_packed
        else:
            w = self.w_aug
        m_phys, k_phys = x.shape
        d_phys = w.shape[1]

        out_bytes = jnp.dtype(out_dtype).itemsize
        sub = 8 * max(1, 4 // out_bytes)          # 8 rows f32, 16 bf16, 32 int8/fp8
        lanes_in = _round_up(k_phys, 128)         # coords tile pads lanes to 128
        lanes_out = _round_up(d_phys, 128)
        n_out_buf = out_buffers if out_buffers is not None else 2

        # Row-tile size from a VMEM budget that fits v7x (64 MiB per TensorCore),
        # accounting for (8, 128) sublane/lane padding of every buffer.
        per_row_bytes = n_out_buf * lanes_out * out_bytes + 2 * lanes_in * 4
        budget = 24 << 20
        tm_cap = max(sub, (budget // per_row_bytes) // sub * sub)
        tm = min(_round_up(tile_rows, sub), tm_cap, _round_up(max(m_phys, sub), sub))
        grid = (pl.cdiv(m_phys, tm),)             # ragged final block -> masked writes

        w_vmem = 2 * _round_up(k_phys, 8) * lanes_out * 4
        vmem_est = tm * per_row_bytes + w_vmem
        vmem_limit = int(min(48 << 20, max(vmem_est + (4 << 20), 16 << 20)))

        out_spec_kwargs = {}
        if out_buffers is not None:
            # e.g. pl.Buffered(3) on v5e if xprof shows exposed output-writeback DMA.
            out_spec_kwargs["pipeline_mode"] = pl.Buffered(out_buffers)
        out_spec = pl.BlockSpec((tm, d_phys), lambda i: (i, 0), **out_spec_kwargs)

        emb = pl.pallas_call(
            _sincos_kernel,
            out_shape=jax.ShapeDtypeStruct((m_phys, d_phys), out_dtype),
            grid=grid,
            in_specs=[
                pl.BlockSpec((tm, k_phys), lambda i: (i, 0)),
                pl.BlockSpec((k_phys, d_phys), lambda i: (0, 0)),
            ],
            out_specs=out_spec,
            compiler_params=pltpu.CompilerParams(
                dimension_semantics=("parallel",),
                vmem_limit_bytes=vmem_limit,
            ),
            cost_estimate=pl.CostEstimate(
                flops=2 * m_phys * k_phys * d_phys,
                transcendentals=m * self.dim,
                bytes_accessed=(m_phys * k_phys * 4          # coords (+ones) read
                                + k_phys * d_phys * 4        # W read once
                                + m * self.dim * out_bytes), # output written
            ),
        )(x, w)

        # Row-major (M/P, P*dim) and (M, dim) are byte-identical -> free reshape.
        return emb.reshape(*lead_shape, self.dim)


def _reference(coords, omega_f32, dim, ndim, padding):
    """Pure-JAX replica of the PyTorch forward (sincos branch)."""
    eff = (dim - padding) // ndim
    out = coords[..., None].astype(jnp.float32) * omega_f32[None, :]  # (..., ndim, half)
    emb = jnp.concatenate([jnp.sin(out), jnp.cos(out)], axis=-1)      # (..., ndim, eff)
    emb = emb.reshape(*coords.shape[:-1], ndim * eff)
    if padding > 0:
        emb = jnp.concatenate(
            [emb, jnp.zeros((*emb.shape[:-1], padding), emb.dtype)], axis=-1)
    return emb.astype(coords.dtype)


if __name__ == "__main__":
    dim, ndim = 32, 2
    module = ContinuousPosEmbedSincos(dim=dim, ndim=ndim)
    omega_f32 = module._omega_f32

    # 1) Small shape consistent with the module: coords (batch=2, num_points=8, ndim=2).
    #    M = 16 is a multiple of the pack factor (P = 4) -> lane-packed path.
    coords = jax.random.uniform(jax.random.PRNGKey(0), (2, 8, ndim),
                                dtype=jnp.float32) * 16.0
    out = jax.block_until_ready(module(coords))
    ref = _reference(coords, omega_f32, dim, ndim, module.padding)
    assert out.shape == (2, 8, dim), out.shape
    assert out.dtype == coords.dtype
    # cos(x) == sin(x + pi/2) rewrite gives only few-ULP f32 differences.
    assert jnp.allclose(out, ref, atol=1e-5, rtol=1e-5), \
        float(jnp.max(jnp.abs(out - ref)))

    # 2) Ragged M (3 * 1037 rows): exercises grid = cdiv with a masked final block —
    #    no host-side padding of coords and no output slice copy.
    coords_big = jax.random.uniform(jax.random.PRNGKey(1), (3, 1037, ndim),
                                    dtype=jnp.float32) * 64.0
    out_big = jax.block_until_ready(module(coords_big, tile_rows=512))
    ref_big = _reference(coords_big, omega_f32, dim, ndim, module.padding)
    assert out_big.shape == (3, 1037, dim)
    assert jnp.allclose(out_big, ref_big, atol=1e-4, rtol=1e-5), \
        float(jnp.max(jnp.abs(out_big - ref_big)))

    # 3) bf16 output: sub-32-bit row-tile granularity + lane-packed path.
    coords_bf16 = (jax.random.uniform(jax.random.PRNGKey(2), (2, 64, ndim),
                                      dtype=jnp.float32) * 32.0).astype(jnp.bfloat16)
    out_bf16 = jax.block_until_ready(module(coords_bf16))
    ref_bf16 = _reference(coords_bf16, omega_f32, dim, ndim, module.padding)
    assert out_bf16.shape == (2, 64, dim)
    assert out_bf16.dtype == jnp.bfloat16
    assert jnp.allclose(out_bf16.astype(jnp.float32), ref_bf16.astype(jnp.float32),
                        atol=2e-2), \
        float(jnp.max(jnp.abs(out_bf16.astype(jnp.float32)
                              - ref_bf16.astype(jnp.float32))))

    print("KERNEL_OK")
</pallas_src>

<mosaic_0001>
module attributes {stable_mosaic.version = 11 : i64} {
  func.func @_sincos_kernel(%arg0: i32, %arg1: memref<8x12xf32, #tpu.memory_space<vmem>>, %arg2: memref<12x128xf32, #tpu.memory_space<vmem>>, %arg3: memref<8x128xf32, #tpu.memory_space<vmem>>) attributes {dimension_semantics = [#tpu.dimension_semantics<parallel>], iteration_bounds = array<i64: 1>, scalar_prefetch = 0 : i64, scratch_operands = 0 : i64, tpu.core_type = #tpu.core_type<tc>, window_params = [{transform_indices = @transform_0, window_bounds = array<i64: 8, 12>}, {pipeline_mode = #tpu.pipeline_mode<synchronous>, transform_indices = @transform_1, window_bounds = array<i64: 12, 128>}, {transform_indices = @transform_2, window_bounds = array<i64: 8, 128>}]} {
    %c0 = arith.constant 0 : index
    %c0_0 = arith.constant 0 : index
    %0 = vector.load %arg1[%c0, %c0_0] : memref<8x12xf32, #tpu.memory_space<vmem>>, vector<8x12xf32>
    %c0_1 = arith.constant 0 : index
    %c0_2 = arith.constant 0 : index
    %1 = vector.load %arg2[%c0_1, %c0_2] : memref<12x128xf32, #tpu.memory_space<vmem>>, vector<12x128xf32>
    %cst = arith.constant dense<0.000000e+00> : vector<8x128xf32>
    %2 = tpu.matmul %0, %1, %cst {dimension_numbers = #tpu.dot_dimension_numbers<[1], [0], [0], [1], [0, 0, 1, 1], [], []>} : vector<8x12xf32>, vector<12x128xf32>, vector<8x128xf32> -> vector<8x128xf32>
    %3 = math.sin %2 : vector<8x128xf32>
    %c0_3 = arith.constant 0 : index
    %c0_4 = arith.constant 0 : index
    %4 = vector.load %arg3[%c0_3, %c0_4] : memref<8x128xf32, #tpu.memory_space<vmem>>, vector<8x128xf32>
    tpu.vector_store %arg3[%c0_3, %c0_4], %3 {strides = array<i32>} : memref<8x128xf32, #tpu.memory_space<vmem>>, vector<8x128xf32>,
    return
  }
  func.func @transform_0(%arg0: i32) -> (i32, i32) {
    %c0_i32 = arith.constant 0 : i32
    %c0_i32_0 = arith.constant 0 : i32
    return %arg0, %c0_i32 : i32, i32
  }
  func.func @transform_1(%arg0: i32) -> (i32, i32) {
    %c0_i32 = arith.constant 0 : i32
    %c0_i32_0 = arith.constant 0 : i32
    %c0_i32_1 = arith.constant 0 : i32
    return %c0_i32, %c0_i32_0 : i32, i32
  }
  func.func @transform_2(%arg0: i32) -> (i32, i32) {
    %c0_i32 = arith.constant 0 : i32
    %c0_i32_0 = arith.constant 0 : i32
    return %arg0, %c0_i32 : i32, i32
  }
}

</mosaic_0001>

<bundles_post_ra>
// kernel: tpu_custom_call.1
= control target key start
LH: loop header
LB: loop body
LE: loop exit
PB: predicated region body
PF: predicated region fallthrough
CT: control target
= control target key end

     0   :  { %7 = vsyncpa [#allocation3], 0  ;;  %s448_s0 = inlined_call_operand.hbm [shape: f32[4,12], index: 0, kind: input, shape index: {}]   ;;  %s449_s1 = inlined_call_operand.hbm [shape: f32[12,128], index: 1, kind: input, shape index: {}]   ;;  %s450_s2 = inlined_call_operand.hbm [shape: f32[4,128], index: 2, kind: output, shape index: {}]  }
   0x1   :  { %8 = vsyncpa [#allocation6], 0 }
   0x2   :  { %9 = vsyncpa [#allocation4], 0 }
   0x3   :  { %13 = vsyncadd [#allocation3], 64  ;;  %s14_s11 = sshll.u32 %s448_s0, 4  ;;  %s348_s12 = smov [#allocation2]   ;;  %s15_s11 = int_to_ptr.hbm [resolvable:$true] %s14_s11 }
   0x4   :  { %s16_s13 = sshll.u32 %s348_s12, 4  ;;  %s27_s16 = sshll.u32 %s449_s1, 4  ;;  %s17_s13 = int_to_ptr.vmem [resolvable:$true] %s16_s13  ;;  %s28_s16 = int_to_ptr.hbm [resolvable:$true] %s27_s16 }
   0x5   :  { %s349_s17 = smov 64   ;;  %s350_s18 = smov 4  }
   0x6   :  { %22 = dma.hbm_to_vmem [thread:$0]  %s15_s11, 64, %s17_s13, [#allocation3], %s349_s17, %s349_s17, %s350_s18  }
   0x7   :  { %s351_s19 = smov [#allocation5]   ;;  %s352_s21 = smov 128  }
   0x8   :  { %s29_s20 = sshll.u32 %s351_s19, 4  ;;  %s353_s0 = smov 8   ;;  %s30_s20 = int_to_ptr.vmem [resolvable:$true] %s29_s20 }
   0x9   :  { %35 = dma.hbm_to_vmem [thread:$0]  %s28_s16, 256, %s30_s20, [#allocation6], %s352_s21, %s352_s21, %s353_s0  }
   0xa   :  { %342 = dma.done.wait [#allocation3], 128  }
   0xb   :  { %343 = vsyncadd [#allocation3], 4294967168 }
   0xc   :  { %344 = dma.done.wait [#allocation6], 256  }
   0xd   :  { %345 = vsyncadd [#allocation6], 4294967040  ;;  %vm51_vm0 = vcmask 1043456   ;;  %v46_v0 = vld [vmem:[#allocation5 + $0x8] sm:$0xf]  ;;  %v45_v1 = vld [vmem:[#allocation5] sm:$0xff] }
   0xe   :  { %251 = vmatpush.msk.msra.mxu0 %vm51_vm0, %v46_v0  ;;  %v44_v2 = vld [vmem:[#allocation2] sm:$0xff]  ;;  %vm47_vm1 = vcmask 97280   ;;  %v354_v15 = vmov 683565275   ;;  %v355_v17 = vmov 2475754826  }
   0xf   :  { %v356_v20 = vmov 2131351028   ;;  %v357_v23 = vmov 2102212464   ;;  %v358_v26 = vmov 920167782  }
  0x10   :  { %70 = vmatpush.msra.mxu0 %v45_v1  ;;  %v359_v29 = vmov 1326507024   ;;  %v360_v63 = vmov 0  }
  0x11   :  { %252 = vmatmul.msk.f32.vlgmr.msra.gmra.mxu0 %vm47_vm1, %v44_v2 }
  0x8e   :  { %v386_v3 = vpop.f32.mrf.mxu0 }
  0x8f   :  { %v78_v4 = vand.u32 2139095040, %v386_v3  ;;  %v75_v7 = vand.u32 2147483647, %v386_v3  ;;  %vm77_vm14 = vcmp.lt.s32.totalorder %v386_v3, 0 }
  0x91   :  { %v79_v5 = vshrl.u32 %v78_v4, 23  ;;  %v82_v9 = vand.u32 8388607, %v75_v7  ;;  %vm76_vm15 = vcmp.le.f32.partialorder %v75_v7, 0.7853982 }
  0x93   :  { %v253_v6 = vadd.s32 4294967169, %v79_v5  ;;  %v83_v13 = vor.u32 8388608, %v82_v9 }
  0x95   :  { %v85_v8 = vadd.s32 1, %v253_v6  ;;  %v403_v36 = vshll.u32 %v83_v13, 8 }
  0x97   :  { %vm86_vm2 = vcmp.gt.s32.totalorder %v85_v8, 0  ;;  %v124_v45 = vand.u32 65535, %v403_v36  ;;  %v125_v46 = vshrl.u32 %v403_v36, 16 }
  0x98   :  { %v87_v10 = vsel %vm86_vm2, %v85_v8, 0 }
  0x99   :  { %v89_v11 = vand.u32 31, %v87_v10  ;;  %v394_v14 = vshrl.u32 %v87_v10, 5 }
  0x9b   :  { %v392_v12 = vsub.s32 32, %v89_v11  ;;  %v92_v16 = vshll.u32 %v354_v15, %v89_v11  ;;  %v95_v18 = vshll.u32 %v355_v17, %v89_v11  ;;  %v98_v22 = vshll.u32 %v356_v20, %v89_v11 }
  0x9c   :  { %v101_v25 = vshll.u32 %v357_v23, %v89_v11  ;;  %v104_v28 = vshll.u32 %v358_v26, %v89_v11  ;;  %vm107_vm3 = vcmp.lt.s32.totalorder %v394_v14, 1  ;;  %vm110_vm4 = vcmp.lt.s32.totalorder %v394_v14, 4 }
  0x9d   :  { %v93_v19 = vshrl.u32 %v355_v17, %v392_v12  ;;  %v96_v21 = vshrl.u32 %v356_v20, %v392_v12  ;;  %v99_v24 = vshrl.u32 %v357_v23, %v392_v12  ;;  %v102_v27 = vshrl.u32 %v358_v26, %v392_v12 }
  0x9e   :  { %v105_v30 = vshrl.u32 %v359_v29, %v392_v12  ;;  %vm109_vm5 = vcmp.lt.s32.totalorder %v394_v14, 3  ;;  %vm108_vm6 = vcmp.lt.s32.totalorder %v394_v14, 2  ;;  %v91_v10 = vshrl.u32 %v354_v15, %v392_v12 }
  0x9f   :  { %v94_v31 = vor.u32 %v93_v19, %v92_v16  ;;  %v97_v32 = vor.u32 %v96_v21, %v95_v18  ;;  %v100_v33 = vor.u32 %v99_v24, %v98_v22  ;;  %v103_v34 = vor.u32 %v102_v27, %v101_v25 }
  0xa0   :  { %v106_v35 = vor.u32 %v105_v30, %v104_v28 }
  0xa1   :  { %v115_v37 = vsel %vm107_vm3, %v94_v31, %v97_v32  ;;  %v119_v38 = vsel %vm107_vm3, %v97_v32, %v100_v33  ;;  %v116_v39 = vsel %vm110_vm4, %v103_v34, 920167782  ;;  %v112_v6 = vsel %vm110_vm4, %v100_v33, 2102212464 }
  0xa2   :  { %v120_v40 = vsel %vm110_vm4, %v106_v35, 1326507024  ;;  %v117_v41 = vsel %vm109_vm5, %v100_v33, %v116_v39  ;;  %v111_v19 = vsel %vm107_vm3, %v91_v10, %v94_v31  ;;  %v113_v20 = vsel %vm109_vm5, %v97_v32, %v112_v6 }
  0xa3   :  { %v121_v42 = vsel %vm109_vm5, %v103_v34, %v120_v40  ;;  %v118_v43 = vsel %vm108_vm6, %v115_v37, %v117_v41  ;;  %v114_v12 = vsel %vm108_vm6, %v111_v19, %v113_v20  ;;  %vm218_vm3 = vweird.f32 %v386_v3 }
  0xa4   :  { %v122_v44 = vsel %vm108_vm6, %v119_v38, %v121_v42  ;;  %v148_v49 = vand.u32 65535, %v118_v43  ;;  %v149_v50 = vshrl.u32 %v118_v43, 16  ;;  %v168_v28 = vmul.u32 %v403_v36, %v114_v12 }
  0xa5   :  { %v126_v47 = vand.u32 65535, %v122_v44  ;;  %v127_v48 = vshrl.u32 %v122_v44, 16 }
  0xa6   :  { %v151_v53 = vmul.u32 %v149_v50, %v124_v45  ;;  %v152_v54 = vmul.u32 %v148_v49, %v125_v46  ;;  %v150_v58 = vmul.u32 %v148_v49, %v124_v45  ;;  %v153_v62 = vmul.u32 %v149_v50, %v125_v46 }
  0xa7   :  { %v129_v51 = vmul.u32 %v127_v48, %v124_v45  ;;  %v130_v52 = vmul.u32 %v126_v47, %v125_v46  ;;  %v128_v55 = vmul.u32 %v126_v47, %v124_v45  ;;  %v131_v57 = vmul.u32 %v127_v48, %v125_v46 }
  0xa8   :  { %v154_v59 = vshll.u32 %v151_v53, 16  ;;  %v156_v1 = vshll.u32 %v152_v54, 16  ;;  %v155_v17 = vshrl.u32 %v151_v53, 16  ;;  %v157_v23 = vshrl.u32 %v152_v54, 16 }
  0xa9   :  { %v132_v56 = vshll.u32 %v129_v51, 16  ;;  %v134_v60 = vshll.u32 %v130_v52, 16  ;;  %v133_v11 = vshrl.u32 %v129_v51, 16  ;;  %v135_v21 = vshrl.u32 %v130_v52, 16 }
  0xaa   :  { %vm158_vm8 = vc.u32 %v150_v58, %v154_v59  ;;  %v160_v2 = vadd.s32 %v154_v59, %v150_v58 }
  0xab   :  { %vm136_vm7 = vc.u32 %v128_v55, %v132_v56  ;;  %v138_v61 = vadd.s32 %v132_v56, %v128_v55  ;;  %v159_v5 = vsel %vm158_vm8, 1, %v360_v63 }
  0xac   :  { %v137_v0 = vsel %vm136_vm7, 1, %v360_v63  ;;  %v161_v9 = vadd.s32 %v159_v5, %v153_v62  ;;  %vm162_vm10 = vc.u32 %v160_v2, %v156_v1  ;;  %v164_v26 = vadd.s32 %v160_v2, %v156_v1 }
  0xad   :  { %v139_v4 = vadd.s32 %v137_v0, %v131_v57  ;;  %vm140_vm9 = vc.u32 %v138_v61, %v134_v60  ;;  %v163_v16 = vsel %vm162_vm10, 1, %v360_v63 }
  0xae   :  { %v141_v8 = vsel %vm140_vm9, 1, %v360_v63  ;;  %v165_v18 = vadd.s32 %v163_v16, %v161_v9 }
  0xaf   :  { %v143_v13 = vadd.s32 %v141_v8, %v139_v4 }
  0xb0   :  { %v166_v24 = vadd.s32 %v165_v18, %v155_v17 }
  0xb1   :  { %v144_v22 = vadd.s32 %v143_v13, %v133_v11 }
  0xb2   :  { %v167_v15 = vadd.s32 %v166_v24, %v157_v23 }
  0xb3   :  { %v145_v25 = vadd.s32 %v144_v22, %v135_v21 }
  0xb4   :  { %v171_v27 = vadd.s32 1, %v167_v15 }
  0xb5   :  { %vm170_vm11 = vc.u32 %v145_v25, %v164_v26  ;;  %v169_v14 = vadd.s32 %v164_v26, %v145_v25 }
  0xb6   :  { %v172_v29 = vsel %vm170_vm11, %v171_v27, %v167_v15 }
  0xb7   :  { %v173_v30 = vadd.s32 %v172_v29, %v168_v28 }
  0xb9   :  { %v174_v31 = vadd.s32 536870912, %v173_v30 }
  0xbb   :  { %v175_v33 = vshrl.u32 %v174_v31, 30 }
  0xbd   :  { %v176_v34 = vshll.u32 %v175_v33, 30  ;;  %v199_v53 = vsub.s32 4, %v175_v33 }
  0xbf   :  { %v177_v32 = vsub.s32 %v173_v30, %v176_v34  ;;  %v200_v58 = vsel %vm77_vm14, %v199_v53, %v175_v33 }
  0xc0   :  { %v202_v61 = vsel %vm76_vm15, 0, %v200_v58 }
  0xc1   :  { %vm178_vm12 = vcmp.lt.s32.totalorder %v177_v32, 0  ;;  %v179_v35 = vsub.s32 0, %v177_v32  ;;  %v219_v2 = vadd.s32 3, %v202_v61 }
  0xc3   :  { %v180_v37 = vsel %vm178_vm12, %v179_v35, %v177_v32  ;;  %v220_v8 = vand.u32 3, %v219_v2 }
  0xc4   :  { %v181_v38 = vclz %v180_v37 }
  0xc5   :  { %vm222_vm0 = vcmp.eq.s32.totalorder %v220_v8, 0  ;;  %vm225_vm1 = vcmp.eq.s32.totalorder %v220_v8, 2  ;;  %vm221_vm2 = vcmp.lt.s32.totalorder %v220_v8, 2 }
  0xc6   :  { %v254_v39 = vadd.s32 4294967294, %v181_v38 }
  0xc8   :  { %vm255_vm13 = vcmp.lt.s32.totalorder %v254_v39, 0 }
  0xc9   :  { %v184_v40 = vsel %vm255_vm13, 0, %v254_v39 }
  0xca   :  { %v185_v41 = vsub.s32 32, %v184_v40  ;;  %v189_v42 = vsub.s32 4294967266, %v184_v40  ;;  %v186_v43 = vshll.u32 %v177_v32, %v184_v40 }
  0xcc   :  { %v187_v44 = vshrl.u32 %v169_v14, %v185_v41  ;;  %v190_v45 = vadd.s32 127, %v189_v42 }
  0xce   :  { %v188_v36 = vor.u32 %v187_v44, %v186_v43  ;;  %v191_v46 = vshll.u32 %v190_v45, 23 }
  0xd0   :  { %v192_v47 = vor.u32 4788187, %v191_v46  ;;  %v195_v49 = vcvt.s32.f32 %v188_v36 }
  0xd2   :  { %v193_v48 = vand.u32 2147483647, %v192_v47 }
  0xd4   :  { %v196_v50 = vmul.f32 %v195_v49, %v193_v48 }
  0xd6   :  { %v197_v51 = vxor.u32 2147483648, %v196_v50 }
  0xd8   :  { %v198_v52 = vsel %vm77_vm14, %v197_v51, %v196_v50 }
  0xd9   :  { %v201_v54 = vsel %vm76_vm15, %v386_v3, %v198_v52 }
  0xda   :  { %v203_v55 = vmul.f32 %v201_v54, %v201_v54 }
  0xdc   :  { %v204_v56 = vmul.f32 -0.001358992, %v203_v55  ;;  %v211_v57 = vmul.f32 -0.00019511016, %v203_v55 }
  0xde   :  { %v205_v59 = vadd.f32 0.041655596, %v204_v56  ;;  %v212_v60 = vadd.f32 0.008332121, %v211_v57 }
  0xe0   :  { %v206_v62 = vmul.f32 %v205_v59, %v203_v55  ;;  %v213_v63 = vmul.f32 %v212_v60, %v203_v55 }
  0xe2   :  { %v207_v0 = vadd.f32 -0.4999988, %v206_v62  ;;  %v214_v1 = vadd.f32 -0.16666654, %v213_v63 }
  0xe4   :  { %v208_v4 = vmul.f32 %v207_v0, %v203_v55  ;;  %v215_v5 = vmul.f32 %v214_v1, %v203_v55 }
  0xe6   :  { %v209_v6 = vadd.f32 1.0, %v208_v4  ;;  %v216_v7 = vadd.f32 1.0, %v215_v5 }
  0xe8   :  { %v217_v9 = vmul.f32 %v216_v7, %v201_v54  ;;  %v226_v10 = vxor.u32 2147483648, %v209_v6 }
  0xea   :  { %v223_v11 = vxor.u32 2147483648, %v217_v9  ;;  %v227_v16 = vsel %vm225_vm1, %v226_v10, %v217_v9 }
  0xec   :  { %v224_v13 = vsel %vm222_vm0, %v209_v6, %v223_v11 }
  0xed   :  { %v228_v17 = vsel %vm221_vm2, %v224_v13, %v227_v16 }
  0xee   :  { %v229_v18 = vsel %vm218_vm3, nan, %v228_v17 }
  0xef   :  { %230 = vst [vmem:[#allocation7] sm:$0xff] %v229_v18 }
  0xf0   :  { %234 = vsyncadd [#allocation4], 64  ;;  %s237_s23 = sshll.u32 %s450_s2, 4  ;;  %s361_s24 = smov [#allocation7]   ;;  %s238_s23 = int_to_ptr.hbm [resolvable:$true] %s237_s23 }
  0xf1   :  { %s235_s25 = sshll.u32 %s361_s24, 4  ;;  %s236_s25 = int_to_ptr.vmem [resolvable:$true] %s235_s25 }
  0xf2   :  { %243 = dma.vmem_to_hbm [thread:$0]  %s236_s25, 64, %s238_s23, [#allocation4], %s349_s17, %s349_s17, %s350_s18  }
  0xf3   :  { %346 = dma.done.wait [#allocation4], 128  }
  0xf4   :  { %347 = vsyncadd [#allocation4], 4294967168 }
  0xf5   :  { %248 = vsyncpa [#allocation3], 1 }
  0xf6   :  { %249 = vsyncpa [#allocation6], 1 }
  0xf7   :  { %250 = vsyncpa [#allocation4], 1 }

</bundles_post_ra>
